<compile_context>
chip_gen: v7x
topology: tpu7x:2x2x1
jax: 0.10.0
libtpu: 0.0.40
codegen_flags: <defaults>
</compile_context>

<pallas_src>
import jax
import jax.numpy as jnp
from jax.experimental import pallas as pl
from jax.experimental.pallas import tpu as pltpu


def _model_kernel(x_ref, p_ref, out_ref):
    # x_ref : (4,)  f32 SMEM  -- x1 flattened row-major: x[c, l] at index 2*c + l
    # p_ref : (10,) f32 SMEM  -- [w0[0,0], w0[0,1], w0[1,0], w0[1,1],
    #                             b0[0],  b0[1],
    #                             w1[0,0], w1[0,1], w1[1,0], w1[1,1]]
    # out_ref: (S=2, O=2) f32 VMEM
    S, O = out_ref.shape

    # Full-(S,O) masks so every jnp.where below produces an already
    # lane/sublane-dense vreg (no implicit broadcast relayouts).
    smask0 = jax.lax.broadcasted_iota(jnp.int32, (S, O), 0) == 0  # seq index s == 0
    lmask0 = jax.lax.broadcasted_iota(jnp.int32, (S, O), 1) == 0  # out-feature o == 0

    # --- v1 = x1.permute(0,2,1): v1[s, f] = x[f, s]; splat each input feature
    # column across all lanes directly from SMEM scalars (permute is free).
    v1f0 = jnp.where(smask0, x_ref[0], x_ref[1])   # (S,O): v1[s,0] = x[0,s]
    v1f1 = jnp.where(smask0, x_ref[2], x_ref[3])   # (S,O): v1[s,1] = x[1,s]

    # --- linear0: v2[s,o] = sum_f v1[s,f]*w0[o,f] + b0[o]
    # Build v2's per-output-column values as full-(S,O) vregs from scalar
    # splats (pure VPU MACs, no slicing / lane extracts).
    v2c0 = v1f0 * p_ref[0] + v1f1 * p_ref[1] + p_ref[4]   # (S,O): v2[s,0] everywhere
    v2c1 = v1f0 * p_ref[2] + v1f1 * p_ref[3] + p_ref[5]   # (S,O): v2[s,1] everywhere
    v2 = jnp.where(lmask0, v2c0, v2c1)                     # actual v2[s,o]

    # --- linear1 (no bias): v3[s,o] = sum_k v2[s,k]*w1[o,k]
    w1r0 = jnp.where(lmask0, p_ref[6], p_ref[8])           # (S,O): w1[o,0]
    w1r1 = jnp.where(lmask0, p_ref[7], p_ref[9])           # (S,O): w1[o,1]
    v3 = v2c0 * w1r0 + v2c1 * w1r1                          # (S,O), pure VPU MACs

    # --- elementwise tail
    t0 = v2 + v3
    t1 = 0.5 * jnp.tanh(0.5 * t0) + 0.5                     # exact sigmoid, 1 EUP op
    t2 = t1 * v2
    t3 = t0 - t2
    # ELU(alpha=0) == ReLU (dead exp branch removed).
    out_ref[...] = (jnp.maximum(t2, 0.0) + jnp.maximum(t3, 0.0)).astype(out_ref.dtype)


def pack_params(w0, b0, w1):
    """One-time packing of static weights into a single flat SMEM operand."""
    return jnp.concatenate([
        w0.astype(jnp.float32).reshape(-1),
        b0.astype(jnp.float32).reshape(-1),
        w1.astype(jnp.float32).reshape(-1),
    ])


@jax.jit
def model_forward(x1, params):
    """x1: (1, 2, 2) f32; params: (10,) f32 from pack_params(w0, b0, w1)."""
    B, C, L = x1.shape
    assert B == 1 and (C, L) == (2, 2) and params.shape == (10,)

    # Metadata-only flatten (no data movement).
    x_flat = x1.reshape(C * L).astype(jnp.float32)

    out2d = pl.pallas_call(
        _model_kernel,
        out_shape=jax.ShapeDtypeStruct((L, 2), jnp.float32),    # (S, O)
        in_specs=[
            pl.BlockSpec(memory_space=pltpu.MemorySpace.SMEM),   # x scalars
            pl.BlockSpec(memory_space=pltpu.MemorySpace.SMEM),   # packed params
        ],
        out_specs=pl.BlockSpec(memory_space=pltpu.MemorySpace.VMEM),
        compiler_params=pltpu.CompilerParams(vmem_limit_bytes=4 << 20),
        cost_estimate=pl.CostEstimate(flops=40, transcendentals=4,
                                      bytes_accessed=72),
    )(x_flat, params)

    return out2d[None]   # -> (1, S, O), metadata-only rank expand


if __name__ == "__main__":
    key = jax.random.PRNGKey(0)
    k_x, k_w0, k_b0, k_w1 = jax.random.split(key, 4)

    # Input matching torch.randn(1, 2, 2)
    x1 = jax.random.normal(k_x, (1, 2, 2), dtype=jnp.float32)

    # Deterministic parameter init (PyTorch Linear default: U(-1/sqrt(in), 1/sqrt(in)))
    in_f, out_f = 2, 2
    bound = 1.0 / (in_f ** 0.5)
    w0 = jax.random.uniform(k_w0, (out_f, in_f), minval=-bound, maxval=bound, dtype=jnp.float32)
    b0 = jax.random.uniform(k_b0, (out_f,), minval=-bound, maxval=bound, dtype=jnp.float32)
    w1 = jax.random.uniform(k_w1, (out_f, in_f), minval=-bound, maxval=bound, dtype=jnp.float32)

    # Pack static weights once, outside the per-call hot path.
    params = pack_params(w0, b0, w1)
    jax.block_until_ready(params)

    out = model_forward(x1, params)
    jax.block_until_ready(out)

    # Pure-JAX reference of the same forward pass (exact sigmoid).
    v1 = jnp.transpose(x1, (0, 2, 1))
    v2 = v1 @ w0.T + b0
    v3 = v2 @ w1.T
    t0 = v2 + v3
    t1 = jax.nn.sigmoid(t0)
    t2 = t1 * v2
    t3 = t0 - t2
    ref = jnp.maximum(t2, 0.0) + jnp.maximum(t3, 0.0)   # ELU(alpha=0) == ReLU

    assert out.shape == ref.shape == (1, 2, 2)
    # Tight tolerance: the tanh-based sigmoid is numerically exact.
    assert jnp.allclose(out, ref, atol=1e-5, rtol=1e-5), (out, ref)

    print("KERNEL_OK")
</pallas_src>

<mosaic_0001>
module attributes {stable_mosaic.version = 11 : i64} {
  func.func @_model_kernel(%arg0: memref<4xf32, #tpu.memory_space<smem>>, %arg1: memref<10xf32, #tpu.memory_space<smem>>, %arg2: memref<2x2xf32, #tpu.memory_space<vmem>>) attributes {dimension_semantics = [], scalar_prefetch = 0 : i64, scratch_operands = 0 : i64, tpu.core_type = #tpu.core_type<tc>} {
    %0 = tpu.iota {dimensions = array<i32: 0>} : vector<2x2xi32>
    %c0_i32 = arith.constant 0 : i32
    %1 = vector.broadcast %c0_i32 : i32 to vector<2x2xi32>
    %2 = arith.cmpi eq, %0, %1 : vector<2x2xi32>
    %3 = tpu.iota {dimensions = array<i32: 1>} : vector<2x2xi32>
    %c0_i32_0 = arith.constant 0 : i32
    %4 = vector.broadcast %c0_i32_0 : i32 to vector<2x2xi32>
    %5 = arith.cmpi eq, %3, %4 : vector<2x2xi32>
    %c0 = arith.constant 0 : index
    %6 = memref.load %arg0[%c0] : memref<4xf32, #tpu.memory_space<smem>>
    %c1 = arith.constant 1 : index
    %7 = memref.load %arg0[%c1] : memref<4xf32, #tpu.memory_space<smem>>
    %8 = vector.broadcast %6 : f32 to vector<2x2xf32>
    %9 = vector.broadcast %7 : f32 to vector<2x2xf32>
    %10 = arith.select %2, %8, %9 : vector<2x2xi1>, vector<2x2xf32>
    %c2 = arith.constant 2 : index
    %11 = memref.load %arg0[%c2] : memref<4xf32, #tpu.memory_space<smem>>
    %c3 = arith.constant 3 : index
    %12 = memref.load %arg0[%c3] : memref<4xf32, #tpu.memory_space<smem>>
    %13 = vector.broadcast %11 : f32 to vector<2x2xf32>
    %14 = vector.broadcast %12 : f32 to vector<2x2xf32>
    %15 = arith.select %2, %13, %14 : vector<2x2xi1>, vector<2x2xf32>
    %c0_1 = arith.constant 0 : index
    %16 = memref.load %arg1[%c0_1] : memref<10xf32, #tpu.memory_space<smem>>
    %17 = vector.broadcast %16 : f32 to vector<2x2xf32>
    %18 = arith.mulf %10, %17 : vector<2x2xf32>
    %c1_2 = arith.constant 1 : index
    %19 = memref.load %arg1[%c1_2] : memref<10xf32, #tpu.memory_space<smem>>
    %20 = vector.broadcast %19 : f32 to vector<2x2xf32>
    %21 = arith.mulf %15, %20 : vector<2x2xf32>
    %22 = arith.addf %18, %21 : vector<2x2xf32>
    %c4 = arith.constant 4 : index
    %23 = memref.load %arg1[%c4] : memref<10xf32, #tpu.memory_space<smem>>
    %24 = vector.broadcast %23 : f32 to vector<2x2xf32>
    %25 = arith.addf %22, %24 : vector<2x2xf32>
    %c2_3 = arith.constant 2 : index
    %26 = memref.load %arg1[%c2_3] : memref<10xf32, #tpu.memory_space<smem>>
    %27 = vector.broadcast %26 : f32 to vector<2x2xf32>
    %28 = arith.mulf %10, %27 : vector<2x2xf32>
    %c3_4 = arith.constant 3 : index
    %29 = memref.load %arg1[%c3_4] : memref<10xf32, #tpu.memory_space<smem>>
    %30 = vector.broadcast %29 : f32 to vector<2x2xf32>
    %31 = arith.mulf %15, %30 : vector<2x2xf32>
    %32 = arith.addf %28, %31 : vector<2x2xf32>
    %c5 = arith.constant 5 : index
    %33 = memref.load %arg1[%c5] : memref<10xf32, #tpu.memory_space<smem>>
    %34 = vector.broadcast %33 : f32 to vector<2x2xf32>
    %35 = arith.addf %32, %34 : vector<2x2xf32>
    %36 = arith.select %5, %25, %35 : vector<2x2xi1>, vector<2x2xf32>
    %c6 = arith.constant 6 : index
    %37 = memref.load %arg1[%c6] : memref<10xf32, #tpu.memory_space<smem>>
    %c8 = arith.constant 8 : index
    %38 = memref.load %arg1[%c8] : memref<10xf32, #tpu.memory_space<smem>>
    %39 = vector.broadcast %37 : f32 to vector<2x2xf32>
    %40 = vector.broadcast %38 : f32 to vector<2x2xf32>
    %41 = arith.select %5, %39, %40 : vector<2x2xi1>, vector<2x2xf32>
    %c7 = arith.constant 7 : index
    %42 = memref.load %arg1[%c7] : memref<10xf32, #tpu.memory_space<smem>>
    %c9 = arith.constant 9 : index
    %43 = memref.load %arg1[%c9] : memref<10xf32, #tpu.memory_space<smem>>
    %44 = vector.broadcast %42 : f32 to vector<2x2xf32>
    %45 = vector.broadcast %43 : f32 to vector<2x2xf32>
    %46 = arith.select %5, %44, %45 : vector<2x2xi1>, vector<2x2xf32>
    %47 = arith.mulf %25, %41 : vector<2x2xf32>
    %48 = arith.mulf %35, %46 : vector<2x2xf32>
    %49 = arith.addf %47, %48 : vector<2x2xf32>
    %50 = arith.addf %36, %49 : vector<2x2xf32>
    %cst = arith.constant 5.000000e-01 : f32
    %51 = vector.broadcast %cst : f32 to vector<2x2xf32>
    %52 = arith.mulf %51, %50 : vector<2x2xf32>
    %53 = math.tanh %52 : vector<2x2xf32>
    %cst_5 = arith.constant 5.000000e-01 : f32
    %54 = vector.broadcast %cst_5 : f32 to vector<2x2xf32>
    %55 = arith.mulf %54, %53 : vector<2x2xf32>
    %cst_6 = arith.constant 5.000000e-01 : f32
    %56 = vector.broadcast %cst_6 : f32 to vector<2x2xf32>
    %57 = arith.addf %55, %56 : vector<2x2xf32>
    %58 = arith.mulf %57, %36 : vector<2x2xf32>
    %59 = arith.subf %50, %58 : vector<2x2xf32>
    %cst_7 = arith.constant 0.000000e+00 : f32
    %60 = vector.broadcast %cst_7 : f32 to vector<2x2xf32>
    %61 = arith.maximumf %58, %60 : vector<2x2xf32>
    %cst_8 = arith.constant 0.000000e+00 : f32
    %62 = vector.broadcast %cst_8 : f32 to vector<2x2xf32>
    %63 = arith.maximumf %59, %62 : vector<2x2xf32>
    %64 = arith.addf %61, %63 : vector<2x2xf32>
    %c0_9 = arith.constant 0 : index
    %c0_10 = arith.constant 0 : index
    %65 = vector.load %arg2[%c0_9, %c0_10] : memref<2x2xf32, #tpu.memory_space<vmem>>, vector<2x2xf32>
    tpu.vector_store %arg2[%c0_9, %c0_10], %64 {strides = array<i32>} : memref<2x2xf32, #tpu.memory_space<vmem>>, vector<2x2xf32>,
    return
  }
}

</mosaic_0001>

<bundles_post_ra>
// kernel: model_forward.1
= control target key start
LH: loop header
LB: loop body
LE: loop exit
PB: predicated region body
PF: predicated region fallthrough
CT: control target
= control target key end

     0   :  { %7 = vsyncpa [#allocation4], 0  ;;  %s229_s0 = inlined_call_operand.vmem [shape: f32[4], index: 0, kind: input, shape index: {}]   ;;  %s230_s1 = inlined_call_operand.vmem [shape: f32[10], index: 1, kind: input, shape index: {}]   ;;  %s231_s2 = inlined_call_operand.hbm [shape: f32[2,2], index: 2, kind: output, shape index: {}]  }
   0x1   :  { %8 = vsyncpa [#allocation6], 0 }
   0x2   :  { %9 = vsyncpa [#allocation3], 0  ;;  %s16_s11 = sshll.u32 %s229_s0, 4  ;;  %s26_s14 = sshll.u32 %s230_s1, 4  ;;  %s17_s11 = int_to_ptr.vmem [resolvable:$true] %s16_s11  ;;  %s27_s14 = int_to_ptr.vmem [resolvable:$true] %s26_s14 }
   0x3   :  { %s132_s15 = scalar_lea.vmem %s17_s11, 16  ;;  %p137_p1 = scmp.lt.s32.totalorder %s17_s11, %s17_s11 }
   0x4   :  { %p133_p0 = scmp.ne.s32.totalorder %s17_s11, %s132_s15  ;;  %p138_p2 = scmp.lt.s32.totalorder %s132_s15, %s132_s15 }
   0x6   :  { %p139_p3 = por %p138_p2, %p137_p1 }
   0x8   :  { %p140_p4 = pnand %p139_p3, %p133_p0 }
   0xa   :  { %143 = shalt.err (!%p140_p4)
}
   0xb   :  { %s184_s16 = smov [#allocation2]   ;;  %s144_s17 = scalar_lea.vmem %s27_s14, 16 }
   0xc   :  { %19 = dma.vmem_to_smem %s17_s11, 16, %s184_s16, [#allocation4]  }
   0xd   :  { %p145_p5 = scmp.ne.s32.totalorder %s27_s14, %s144_s17  ;;  %p149_p6 = scmp.lt.s32.totalorder %s27_s14, %s27_s14 }
   0xe   :  { %p150_p7 = scmp.lt.s32.totalorder %s144_s17, %s144_s17 }
  0x10   :  { %p151_p8 = por %p150_p7, %p149_p6 }
  0x12   :  { %p152_p9 = pnand %p151_p8, %p145_p5 }
  0x14   :  { %155 = shalt.err (!%p152_p9)
}
  0x15   :  { %s185_s0 = smov [#allocation5]  }
  0x16   :  { %29 = dma.vmem_to_smem %s27_s14, 16, %s185_s0, [#allocation6]  }
  0x17   :  { %178 = dma.done.wait [#allocation4], 16  }
  0x18   :  { %179 = vsyncadd [#allocation4], 4294967280 }
  0x19   :  { %180 = dma.done.wait [#allocation6], 16  }
  0x1a   :  { %181 = vsyncadd [#allocation6], 4294967280 }
  0x1b   :  { %36 = sfence }
  0x1c   :  { %v37_v0 = vlaneseq  ;;  %s43_s1 = sld [smem:[#allocation2]]  ;;  %s115_s18 = sld [smem:[#allocation2 + $0x1]]  ;;  %vm97_vm2 = vcmask 9216  }
  0x1d   :  { %s116_s19 = sld [smem:[#allocation2 + $0x2]]  ;;  %s117_s20 = sld [smem:[#allocation2 + $0x3]] }
  0x1e   :  { %v38_v1 = vshrl.u32 %v37_v0, 7  ;;  %s53_s21 = sld [smem:[#allocation5]]  ;;  %s118_s22 = sld [smem:[#allocation5 + $0x1]]  ;;  %v41_v2 = vand.u32 127, %v37_v0 }
  0x1f   :  { %s208_s23 = sld [smem:[#allocation5 + $0x4]]  ;;  %s120_s24 = sld [smem:[#allocation5 + $0x2]] }
  0x20   :  { %vm39_vm0 = vcmp.eq.s32.totalorder %v38_v1, 0  ;;  %s121_s25 = sld [smem:[#allocation5 + $0x3]]  ;;  %s210_s26 = sld [smem:[#allocation5 + $0x5]]  ;;  %vm42_vm1 = vcmp.eq.s32.totalorder %v41_v2, 0 }
  0x21   :  { %s123_s27 = sld [smem:[#allocation5 + $0x6]]  ;;  %s124_s28 = sld [smem:[#allocation5 + $0x8]] }
  0x22   :  { %v45_v3 = vstv %s43_s1  ;;  %v46_v4 = vstv %s115_s18  ;;  %s125_s29 = sld [smem:[#allocation5 + $0x7]]  ;;  %s126_s30 = sld [smem:[#allocation5 + $0x9]] }
  0x23   :  { %v47_v5 = vsel %vm39_vm0, %v45_v3, %v46_v4  ;;  %v50_v6 = vstv %s116_s19  ;;  %v51_v7 = vstv %s117_s20  ;;  %s186_s3 = smov [#allocation7]  }
  0x24   :  { %v52_v8 = vsel %vm39_vm0, %v50_v6, %v51_v7  ;;  %v54_v9 = vstv %s53_s21  ;;  %v57_v10 = vstv %s118_s22  ;;  %s105_s4 = sshll.u32 %s186_s3, 4  ;;  %s106_s4 = int_to_ptr.vmem [resolvable:$true] %s105_s4 }
  0x25   :  { %v55_v11 = vmul.f32 %v54_v9, %v47_v5  ;;  %v58_v12 = vmul.f32 %v57_v10, %v52_v8  ;;  %v64_v13 = vstv %s120_s24  ;;  %v61_v14 = vstv %s208_s23  ;;  %s156_s5 = scalar_lea.vmem %s106_s4, 32  ;;  %p161_p11 = scmp.lt.s32.totalorder %s106_s4, %s106_s4 }
  0x26   :  { %v65_v15 = vmul.f32 %v64_v13, %v47_v5  ;;  %v67_v16 = vstv %s121_s25  ;;  %v71_v21 = vstv %s210_s26  ;;  %p157_p10 = scmp.ne.s32.totalorder %s106_s4, %s156_s5  ;;  %p162_p12 = scmp.lt.s32.totalorder %s156_s5, %s156_s5 }
  0x27   :  { %v59_v17 = vadd.f32 %v58_v12, %v55_v11  ;;  %v68_v18 = vmul.f32 %v67_v16, %v52_v8  ;;  %v76_v19 = vstv %s123_s27  ;;  %v77_v20 = vstv %s124_s28 }
  0x28   :  { %v78_v22 = vsel %vm42_vm1, %v76_v19, %v77_v20  ;;  %v81_v23 = vstv %s125_s29  ;;  %v82_v24 = vstv %s126_s30  ;;  %p163_p13 = por %p162_p12, %p161_p11 }
  0x29   :  { %v62_v25 = vadd.f32 %v61_v14, %v59_v17  ;;  %v69_v26 = vadd.f32 %v68_v18, %v65_v15  ;;  %v83_v27 = vsel %vm42_vm1, %v81_v23, %v82_v24 }
  0x2a   :  { %p164_p0 = pnand %p163_p13, %p157_p10 }
  0x2b   :  { %v72_v28 = vadd.f32 %v71_v21, %v69_v26  ;;  %v84_v29 = vmul.f32 %v78_v22, %v62_v25 }
  0x2d   :  { %v85_v30 = vmul.f32 %v83_v27, %v72_v28  ;;  %v73_v31 = vsel %vm42_vm1, %v62_v25, %v72_v28 }
  0x2f   :  { %v86_v32 = vadd.f32 %v85_v30, %v84_v29 }
  0x31   :  { %v87_v33 = vadd.f32 %v86_v32, %v73_v31 }
  0x33   :  { %v88_v34 = vmul.f32 0.5, %v87_v33 }
  0x35   :  { %130 = vtanh.f32 %v88_v34 }
  0x3f   :  { %v131_v35 = vpop.eup %130 }
  0x40   :  { %v90_v36 = vmul.f32 0.5, %v131_v35 }
  0x42   :  { %v91_v37 = vadd.f32 0.5, %v90_v36 }
  0x44   :  { %v92_v38 = vmul.f32 %v91_v37, %v73_v31 }
  0x46   :  { %v93_v39 = vsub.f32 %v87_v33, %v92_v38  ;;  %v94_v40 = vmax.f32 %v92_v38, 0.0 }
  0x48   :  { %v95_v41 = vmax.f32 %v93_v39, 0.0 }
  0x4a   :  { %v96_v42 = vadd.f32 %v95_v41, %v94_v40 }
  0x4c   :  { %98 = vst.msk [vmem:[#allocation7] sm:$0x3] %vm97_vm2, %v96_v42 }
  0x4d   :  { %167 = shalt.err (!%p164_p0)
}
  0x4e   :  { %s168_s8 = scalar_lea.hbm %s231_s2, 32 }
  0x4f   :  { %p169_p1 = scmp.ne.s32.totalorder %s231_s2, %s168_s8  ;;  %p172_p2 = scmp.lt.u32.totalorder %s168_s8, %s231_s2 }
  0x51   :  { %p174_p3 = pnand %p172_p2, %p169_p1 }
  0x53   :  { %177 = shalt.err (!%p174_p3)
}
  0x54   :  { %108 = dma.vmem_to_hbm [thread:$0]  %s106_s4, 32, %s231_s2, [#allocation3]  }
  0x55   :  { %182 = dma.done.wait [#allocation3], 32  }
  0x56   :  { %183 = vsyncadd [#allocation3], 4294967264 }
  0x57   :  { %112 = vsyncpa [#allocation3], 1 }
  0x58   :  { %113 = vsyncpa [#allocation4], 1 }
  0x59   :  { %114 = vsyncpa [#allocation6], 1 }

</bundles_post_ra>
